<compile_context>
chip_gen: v5e
topology: v5e:2x2
jax: 0.10.0
libtpu: 0.0.40
codegen_flags: <defaults>
</compile_context>

<pallas_src>
import functools

import jax
import jax.numpy as jnp
from jax import lax
from jax.experimental import pallas as pl
from jax.experimental.pallas import tpu as pltpu


def _round_up(x, m):
    return (x + m - 1) // m * m


def _kdeth_kernel(logits_ref, emb_ref, out_ref, *, T, th_weight, batch, num_classes):
    """Processes one batch tile.

    logits_ref : (2, TB, Cp)  [0] = y_t, [1] = y_s_th   (zero padded)
    emb_ref    : (2, TB, Dp)  [0] = e_s, [1] = e_t      (zero padded)
    out_ref    : (8, 128) per-core accumulator block (every element holds the running sum)
    """
    f32 = jnp.float32

    @pl.when(pl.program_id(1) == 0)
    def _init():
        out_ref[...] = jnp.zeros_like(out_ref)

    # ---------------- KDE: sum-MSE of L2-normalized embeddings -----------------
    e = emb_ref[...].astype(f32)                           # (2, TB, Dp)
    sq = jnp.sum(e * e, axis=-1, keepdims=True)            # (2, TB, 1)
    # 1/max(||e||, 1e-12) == rsqrt(max(||e||^2, 1e-24))  (matches F.normalize eps)
    inv_norm = lax.rsqrt(jnp.maximum(sq, 1e-24))
    en = e * inv_norm
    diff = en[0] - en[1]
    kde_part = jnp.sum(diff * diff)

    # ---------------- KDTH: KL(softmax(y_t/T) || log_softmax(y_s_th/T)) --------
    z = logits_ref[...].astype(f32) * (1.0 / T)            # (2, TB, Cp)
    Cp = z.shape[-1]
    if Cp != num_classes:                                  # lane mask for padded classes
        lane = lax.broadcasted_iota(jnp.int32, z.shape, 2)
        valid = lane < num_classes
        z_for_max = jnp.where(valid, z, -jnp.inf)
    else:
        valid = None
        z_for_max = z

    m = jnp.max(z_for_max, axis=-1, keepdims=True)         # (2, TB, 1)
    zs = z - m
    ex = jnp.exp(zs)
    if valid is not None:
        ex = jnp.where(valid, ex, 0.0)                     # padded lanes contribute 0
    s = jnp.sum(ex, axis=-1, keepdims=True)                # (2, TB, 1)
    log_s = jnp.log(s)

    # p_t = softmax(y_t/T): EUP reciprocal seed + one Newton step on the tiny column.
    inv_s0 = pl.reciprocal(s[0], approx=True)
    inv_s0 = inv_s0 * (2.0 - s[0] * inv_s0)
    p_t = ex[0] * inv_s0                                   # padded lanes: exactly 0

    # log_softmax difference; finite everywhere (padded lanes killed by p_t == 0).
    d = (zs[0] - log_s[0]) - (zs[1] - log_s[1])
    kl_part = jnp.sum(p_t * d)

    scale = th_weight * T * T / batch
    out_ref[...] = out_ref[...] + (kde_part + scale * kl_part)


def kdeth_loss(y_s, y_t, embedding_s, embedding_t, *, T=4.0, th_weight=1.0):
    """y_s is a tuple (y_s_main, y_s_th), mirroring the PyTorch module."""
    y_s_main, y_s_th = y_s
    B = y_s_main.shape[0]
    C = y_t.shape[1]
    D = embedding_s.shape[1]

    Cp = _round_up(C, 128)
    Dp = _round_up(D, 128)

    # Large streaming tiles (amortize per-step overhead) bounded so the double-buffered
    # working set stays ~12 MiB even on v7x (64 MiB physical VMEM).
    budget_rows = max(8, min(1024, (786432 // (Cp + Dp)) // 8 * 8))
    rows_half = (B + 1) // 2                    # batch split across the 2-way parallel axis
    tile_b = min(budget_rows, _round_up(rows_half, 8))
    nb_half = -(-rows_half // tile_b)           # batch tiles per core
    b_pad = 2 * nb_half * tile_b

    def pad2(x, rows, cols):
        r, c = x.shape
        return jnp.pad(x, ((0, rows - r), (0, cols - c)))

    # Stack teacher/student-head logits (and the two embeddings) -> half the DMAs and
    # fused row reductions.  Zero padding is exact for both loss terms.
    logits = jnp.stack([pad2(y_t, b_pad, Cp), pad2(y_s_th, b_pad, Cp)], axis=0)
    embs = jnp.stack([pad2(embedding_s, b_pad, Dp), pad2(embedding_t, b_pad, Dp)], axis=0)

    kernel = functools.partial(
        _kdeth_kernel,
        T=float(T), th_weight=float(th_weight), batch=float(B), num_classes=C,
    )

    idx = lambda c, i: (0, c * nb_half + i, 0)
    block_bytes = 2 * tile_b * (Cp + Dp) * 4            # one buffer, both stacked inputs
    vmem_limit = int(min(32 << 20, max(2 * block_bytes + (4 << 20), 8 << 20)))

    out = pl.pallas_call(
        kernel,
        out_shape=jax.ShapeDtypeStruct((16, 128), jnp.float32),
        grid_spec=pltpu.PrefetchScalarGridSpec(
            num_scalar_prefetch=0,
            grid=(2, nb_half),
            in_specs=[
                pl.BlockSpec((2, tile_b, Cp), idx),
                pl.BlockSpec((2, tile_b, Dp), idx),
            ],
            out_specs=pl.BlockSpec((8, 128), lambda c, i: (c, 0)),
        ),
        compiler_params=pltpu.CompilerParams(
            dimension_semantics=("parallel", "arbitrary"),
            vmem_limit_bytes=vmem_limit,
        ),
    )(logits, embs)

    # One per-core partial lives at rows 0 and 8 of the (16, 128) output.
    return out[0, 0] + out[8, 0]


def _reference(y_s, y_t, embedding_s, embedding_t, T=4.0, th_weight=1.0):
    y_s_main, y_s_th = y_s
    eps = 1e-12
    ns = embedding_s / jnp.maximum(
        jnp.linalg.norm(embedding_s, axis=1, keepdims=True), eps)
    nt = embedding_t / jnp.maximum(
        jnp.linalg.norm(embedding_t, axis=1, keepdims=True), eps)
    loss_kde = jnp.sum((ns - nt) ** 2)
    p_t = jax.nn.softmax(y_t / T, axis=1)
    log_p_t = jax.nn.log_softmax(y_t / T, axis=1)
    log_p_s = jax.nn.log_softmax(y_s_th / T, axis=1)
    kl = jnp.sum(p_t * (log_p_t - log_p_s))
    loss_kdth = kl * T * T / y_s_main.shape[0]
    return loss_kde + th_weight * loss_kdth


if __name__ == "__main__":
    key = jax.random.PRNGKey(0)
    k1, k2, k3, k4, k5 = jax.random.split(key, 5)

    B, C, D = 8, 32, 64  # batch, num classes, embedding dim
    y_s_main = jax.random.normal(k1, (B, C), jnp.float32)
    y_s_th = jax.random.normal(k2, (B, C), jnp.float32)
    y_t = jax.random.normal(k3, (B, C), jnp.float32)
    emb_s = jax.random.normal(k4, (B, D), jnp.float32)
    emb_t = jax.random.normal(k5, (B, D), jnp.float32)

    loss = kdeth_loss((y_s_main, y_s_th), y_t, emb_s, emb_t, T=4.0, th_weight=1.0)
    loss = jax.block_until_ready(loss)

    ref = _reference((y_s_main, y_s_th), y_t, emb_s, emb_t, T=4.0, th_weight=1.0)
    assert jnp.allclose(loss, ref, rtol=1e-4, atol=1e-4), (loss, ref)

    print("KERNEL_OK")
</pallas_src>

<mosaic_0001>
module attributes {stable_mosaic.version = 11 : i64} {
  func.func @_kdeth_kernel(%arg0: i32, %arg1: i32, %arg2: memref<2x8x128xf32, #tpu.memory_space<vmem>>, %arg3: memref<2x8x128xf32, #tpu.memory_space<vmem>>, %arg4: memref<8x128xf32, #tpu.memory_space<vmem>>) attributes {dimension_semantics = [#tpu.dimension_semantics<parallel>, #tpu.dimension_semantics<arbitrary>], iteration_bounds = array<i64: 2, 1>, scalar_prefetch = 0 : i64, scratch_operands = 0 : i64, tpu.core_type = #tpu.core_type<tc>, window_params = [{transform_indices = @transform_0, window_bounds = array<i64: 2, 8, 128>}, {transform_indices = @transform_1, window_bounds = array<i64: 2, 8, 128>}, {transform_indices = @transform_2, window_bounds = array<i64: 8, 128>}]} {
    %c0_i32 = arith.constant 0 : i32
    %0 = arith.cmpi eq, %arg1, %c0_i32 : i32
    %1 = arith.extui %0 : i1 to i32
    %c0_i32_0 = arith.constant 0 : i32
    %2 = arith.cmpi ne, %1, %c0_i32_0 : i32
    scf.if %2 {
      %cst_20 = arith.constant 0.000000e+00 : f32
      %77 = vector.broadcast %cst_20 : f32 to vector<8x128xf32>
      %c0_21 = arith.constant 0 : index
      %c0_22 = arith.constant 0 : index
      %78 = vector.load %arg4[%c0_21, %c0_22] : memref<8x128xf32, #tpu.memory_space<vmem>>, vector<8x128xf32>
      tpu.vector_store %arg4[%c0_21, %c0_22], %77 {strides = array<i32>} : memref<8x128xf32, #tpu.memory_space<vmem>>, vector<8x128xf32>,
    } else {
    }
    %c0 = arith.constant 0 : index
    %c0_1 = arith.constant 0 : index
    %c0_2 = arith.constant 0 : index
    %3 = vector.load %arg3[%c0, %c0_1, %c0_2] : memref<2x8x128xf32, #tpu.memory_space<vmem>>, vector<2x8x128xf32>
    %4 = arith.mulf %3, %3 : vector<2x8x128xf32>
    %cst = arith.constant dense<0.000000e+00> : vector<2x8xf32>
    %5 = vector.multi_reduction <add>, %4, %cst [2] : vector<2x8x128xf32> to vector<2x8xf32>
    %6 = vector.shape_cast %5 : vector<2x8xf32> to vector<2x8x1xf32>
    %cst_3 = arith.constant 1.000000e-24 : f32
    %7 = vector.broadcast %cst_3 : f32 to vector<2x8x1xf32>
    %8 = arith.maximumf %6, %7 : vector<2x8x1xf32>
    %9 = math.rsqrt %8 : vector<2x8x1xf32>
    %10 = vector.broadcast %9 : vector<2x8x1xf32> to vector<2x8x128xf32>
    %11 = arith.mulf %3, %10 : vector<2x8x128xf32>
    %12 = vector.extract_strided_slice %11 {offsets = [0, 0, 0], sizes = [1, 8, 128], strides = [1, 1, 1]} : vector<2x8x128xf32> to vector<1x8x128xf32>
    %13 = vector.shape_cast %12 : vector<1x8x128xf32> to vector<8x128xf32>
    %14 = vector.extract_strided_slice %11 {offsets = [1, 0, 0], sizes = [1, 8, 128], strides = [1, 1, 1]} : vector<2x8x128xf32> to vector<1x8x128xf32>
    %15 = vector.shape_cast %14 : vector<1x8x128xf32> to vector<8x128xf32>
    %16 = arith.subf %13, %15 : vector<8x128xf32>
    %17 = arith.mulf %16, %16 : vector<8x128xf32>
    %18 = vector.shape_cast %17 : vector<8x128xf32> to vector<1x8x128xf32>
    %cst_4 = arith.constant dense<0.000000e+00> : vector<1xf32>
    %19 = vector.multi_reduction <add>, %18, %cst_4 [1, 2] : vector<1x8x128xf32> to vector<1xf32>
    %20 = vector.shape_cast %19 : vector<1xf32> to vector<1x1x1xf32>
    %21 = vector.extract %20[0, 0, 0] : f32 from vector<1x1x1xf32>
    %c0_5 = arith.constant 0 : index
    %c0_6 = arith.constant 0 : index
    %c0_7 = arith.constant 0 : index
    %22 = vector.load %arg2[%c0_5, %c0_6, %c0_7] : memref<2x8x128xf32, #tpu.memory_space<vmem>>, vector<2x8x128xf32>
    %cst_8 = arith.constant 2.500000e-01 : f32
    %23 = vector.broadcast %cst_8 : f32 to vector<2x8x128xf32>
    %24 = arith.mulf %22, %23 : vector<2x8x128xf32>
    %25 = tpu.iota {dimensions = array<i32: 2>} : vector<2x8x128xi32>
    %c32_i32 = arith.constant 32 : i32
    %26 = vector.broadcast %c32_i32 : i32 to vector<2x8x128xi32>
    %27 = arith.cmpi slt, %25, %26 : vector<2x8x128xi32>
    %cst_9 = arith.constant 0xFF800000 : f32
    %28 = vector.broadcast %cst_9 : f32 to vector<2x8x128xf32>
    %29 = arith.select %27, %24, %28 : vector<2x8x128xi1>, vector<2x8x128xf32>
    %cst_10 = arith.constant dense<0xFF800000> : vector<2x8xf32>
    %30 = vector.multi_reduction <maximumf>, %29, %cst_10 [2] : vector<2x8x128xf32> to vector<2x8xf32>
    %31 = vector.shape_cast %30 : vector<2x8xf32> to vector<2x8x1xf32>
    %32 = vector.broadcast %31 : vector<2x8x1xf32> to vector<2x8x128xf32>
    %33 = arith.subf %24, %32 : vector<2x8x128xf32>
    %34 = math.exp %33 : vector<2x8x128xf32>
    %cst_11 = arith.constant 0.000000e+00 : f32
    %35 = vector.broadcast %cst_11 : f32 to vector<2x8x128xf32>
    %36 = arith.select %27, %34, %35 : vector<2x8x128xi1>, vector<2x8x128xf32>
    %cst_12 = arith.constant dense<0.000000e+00> : vector<2x8xf32>
    %37 = vector.multi_reduction <add>, %36, %cst_12 [2] : vector<2x8x128xf32> to vector<2x8xf32>
    %38 = vector.shape_cast %37 : vector<2x8xf32> to vector<2x8x1xf32>
    %39 = math.log %38 : vector<2x8x1xf32>
    %40 = vector.extract_strided_slice %38 {offsets = [0, 0, 0], sizes = [1, 8, 1], strides = [1, 1, 1]} : vector<2x8x1xf32> to vector<1x8x1xf32>
    %41 = vector.shape_cast %40 : vector<1x8x1xf32> to vector<8x1xf32>
    %42 = tpu.reciprocal %41 {approx = true} : vector<8x1xf32> -> vector<8x1xf32>
    %43 = vector.extract_strided_slice %38 {offsets = [0, 0, 0], sizes = [1, 8, 1], strides = [1, 1, 1]} : vector<2x8x1xf32> to vector<1x8x1xf32>
    %44 = vector.shape_cast %43 : vector<1x8x1xf32> to vector<8x1xf32>
    %45 = arith.mulf %44, %42 : vector<8x1xf32>
    %cst_13 = arith.constant 2.000000e+00 : f32
    %46 = vector.broadcast %cst_13 : f32 to vector<8x1xf32>
    %47 = arith.subf %46, %45 : vector<8x1xf32>
    %48 = arith.mulf %42, %47 : vector<8x1xf32>
    %49 = vector.extract_strided_slice %36 {offsets = [0, 0, 0], sizes = [1, 8, 128], strides = [1, 1, 1]} : vector<2x8x128xf32> to vector<1x8x128xf32>
    %50 = vector.shape_cast %49 : vector<1x8x128xf32> to vector<8x128xf32>
    %51 = vector.broadcast %48 : vector<8x1xf32> to vector<8x128xf32>
    %52 = arith.mulf %50, %51 : vector<8x128xf32>
    %53 = vector.extract_strided_slice %33 {offsets = [0, 0, 0], sizes = [1, 8, 128], strides = [1, 1, 1]} : vector<2x8x128xf32> to vector<1x8x128xf32>
    %54 = vector.shape_cast %53 : vector<1x8x128xf32> to vector<8x128xf32>
    %55 = vector.extract_strided_slice %39 {offsets = [0, 0, 0], sizes = [1, 8, 1], strides = [1, 1, 1]} : vector<2x8x1xf32> to vector<1x8x1xf32>
    %56 = vector.shape_cast %55 : vector<1x8x1xf32> to vector<8x1xf32>
    %57 = vector.broadcast %56 : vector<8x1xf32> to vector<8x128xf32>
    %58 = arith.subf %54, %57 : vector<8x128xf32>
    %59 = vector.extract_strided_slice %33 {offsets = [1, 0, 0], sizes = [1, 8, 128], strides = [1, 1, 1]} : vector<2x8x128xf32> to vector<1x8x128xf32>
    %60 = vector.shape_cast %59 : vector<1x8x128xf32> to vector<8x128xf32>
    %61 = vector.extract_strided_slice %39 {offsets = [1, 0, 0], sizes = [1, 8, 1], strides = [1, 1, 1]} : vector<2x8x1xf32> to vector<1x8x1xf32>
    %62 = vector.shape_cast %61 : vector<1x8x1xf32> to vector<8x1xf32>
    %63 = vector.broadcast %62 : vector<8x1xf32> to vector<8x128xf32>
    %64 = arith.subf %60, %63 : vector<8x128xf32>
    %65 = arith.subf %58, %64 : vector<8x128xf32>
    %66 = arith.mulf %52, %65 : vector<8x128xf32>
    %67 = vector.shape_cast %66 : vector<8x128xf32> to vector<1x8x128xf32>
    %cst_14 = arith.constant dense<0.000000e+00> : vector<1xf32>
    %68 = vector.multi_reduction <add>, %67, %cst_14 [1, 2] : vector<1x8x128xf32> to vector<1xf32>
    %69 = vector.shape_cast %68 : vector<1xf32> to vector<1x1x1xf32>
    %70 = vector.extract %69[0, 0, 0] : f32 from vector<1x1x1xf32>
    %c0_15 = arith.constant 0 : index
    %c0_16 = arith.constant 0 : index
    %71 = vector.load %arg4[%c0_15, %c0_16] : memref<8x128xf32, #tpu.memory_space<vmem>>, vector<8x128xf32>
    %cst_17 = arith.constant 2.000000e+00 : f32
    %72 = arith.mulf %cst_17, %70 : f32
    %73 = arith.addf %21, %72 : f32
    %74 = vector.broadcast %73 : f32 to vector<8x128xf32>
    %75 = arith.addf %71, %74 : vector<8x128xf32>
    %c0_18 = arith.constant 0 : index
    %c0_19 = arith.constant 0 : index
    %76 = vector.load %arg4[%c0_18, %c0_19] : memref<8x128xf32, #tpu.memory_space<vmem>>, vector<8x128xf32>
    tpu.vector_store %arg4[%c0_18, %c0_19], %75 {strides = array<i32>} : memref<8x128xf32, #tpu.memory_space<vmem>>, vector<8x128xf32>,
    return
  }
  func.func @transform_0(%arg0: i32, %arg1: i32) -> (i32, i32, i32) {
    %c1_i32 = arith.constant 1 : i32
    %0 = arith.muli %arg0, %c1_i32 : i32
    %1 = arith.addi %0, %arg1 : i32
    %c0_i32 = arith.constant 0 : i32
    %c0_i32_0 = arith.constant 0 : i32
    %c0_i32_1 = arith.constant 0 : i32
    return %c0_i32, %1, %c0_i32_0 : i32, i32, i32
  }
  func.func @transform_1(%arg0: i32, %arg1: i32) -> (i32, i32, i32) {
    %c1_i32 = arith.constant 1 : i32
    %0 = arith.muli %arg0, %c1_i32 : i32
    %1 = arith.addi %0, %arg1 : i32
    %c0_i32 = arith.constant 0 : i32
    %c0_i32_0 = arith.constant 0 : i32
    %c0_i32_1 = arith.constant 0 : i32
    return %c0_i32, %1, %c0_i32_0 : i32, i32, i32
  }
  func.func @transform_2(%arg0: i32, %arg1: i32) -> (i32, i32) {
    %c0_i32 = arith.constant 0 : i32
    %c0_i32_0 = arith.constant 0 : i32
    return %arg0, %c0_i32 : i32, i32
  }
}

</mosaic_0001>

<bundles_post_ra>
// kernel: tpu_custom_call.1
= control target key start
LH: loop header
LB: loop body
LE: loop exit
PB: predicated region body
PF: predicated region fallthrough
CT: control target
= control target key end

     0   :  { %s861_s0 = inlined_call_operand.hbm [shape: f32[2,16,128], index: 0, kind: input, shape index: {}]   ;;  %s862_s1 = inlined_call_operand.hbm [shape: f32[2,16,128], index: 1, kind: input, shape index: {}]   ;;  %s863_s2 = inlined_call_operand.hbm [shape: f32[16,128], index: 2, kind: output, shape index: {}]  }
   0x1   :  { %864 = sst [smem:[#allocation11_spill]] %s861_s0 }
   0x2   :  { %7 = vsyncpa [#allocation3], 0 }
   0x3   :  { %9 = vsyncpa [#allocation3 + $0x1], 0 }
   0x4   :  { %10 = vsyncpa [#allocation6], 0 }
   0x5   :  { %12 = vsyncpa [#allocation6 + $0x1], 0 }
   0x6   :  { %13 = vsyncpa [#allocation4], 0 }
   0x7   :  { %15 = vsyncpa [#allocation4 + $0x1], 0  ;;  %s715_s9 = smov 0   ;;  %s717_s10 = smov 0  }
   0x8   :  { %s719_s11 = smov 0   ;;  %s721_s12 = smov 0  }
   0x9   :  { %s723_s13 = smov 0   ;;  %s725_s14 = smov 0  }
   0xa LB: > { %s444_s15 = sadd.s32 4294967295, %s695_s14   ;;  %s445_s16 = sadd.s32 4294967294, %s695_s14   ;;  %s695_s14 = sphi %s725_s14, %s21_s14   ;;  %s691_s13 = sphi %s723_s13, %s875_s13   ;;  %s687_s12 = sphi %s721_s12, %s874_s12   ;;  %s683_s11 = sphi %s719_s11, %s873_s11   ;;  %s679_s10 = sphi %s717_s10, %s872_s10   ;;  %s675_s9 = sphi %s715_s9, %s871_s9  }
   0xb   : > { %s33_s17 = sadd.s32 1, %s691_s13  ;;  %s42_s18 = sadd.s32 1, %s683_s11 }
   0xc   : > { %p35_p0 = scmp.ge.s32.totalorder %s33_s17, 2  ;;  %p49_p1 = scmp.ne.s32.totalorder %s683_s11, %s679_s10 }
   0xd   : > { %p50_p2 = scmp.eq.s32.totalorder %s695_s14, 0  ;;  %p55_p3 = scmp.ne.s32.totalorder %s679_s10, %s675_s9 }
   0xe   : > { %s877_s17 = smov (%p35_p0, %s33_s17), 0  ;;  %p56_p5 = scmp.eq.s32.totalorder %s444_s15, 0 }
   0xf   : > { %p756_p4 = por %p50_p2, %p49_p1  ;;  %s39_s20 = ssub.s32 %s691_s13, %s877_s17 }
  0x10   : > { %p107_p6 = scmp.eq.s32.totalorder %s444_s15, 1  ;;  %p40_p7 = scmp.eq.s32.totalorder %s39_s20, 0 }
  0x11   : > { %p762_p8 = por %p56_p5, %p55_p3  ;;  %p113_p10 = scmp.eq.s32.totalorder %s445_s16, 1 }
  0x12   : > { %p766_p9 = por %p107_p6, %p49_p1  ;;  %p447_p12 = scmp.ge.s32.totalorder %s695_s14, 2 }
  0x13   : > { %s771_s23 = scalar_select %p40_p7, %s683_s11, %s42_s18  }
  0x14   : > { %p773_p11 = por %p113_p10, %p55_p3  ;;  %p481_p13 = scmp.lt.s32.totalorder %s695_s14, 2 }
  0x15   : > { %s780_s25 = sand.u32 1, %s683_s11   ;;  %s449_s27 = sshll.u32 %s691_s13, 3 }
  0x16   : > { %s448_s26 = sshll.u32 %s780_s25, 4  ;;  %s869_s0 = sld [smem:[#allocation11_spill]] }
  0x17   : > { %s137_s3 = scalar_lea.vmem [#allocation2], %s448_s26  ;;  %p789_p0 = pnand %p481_p13, %p756_p4 }
  0x18   : > { %s145_s4 = sshll.u32 %s137_s3, 4  ;;  %s134_s7 = scalar_lea.sflag [#allocation3], %s780_s25  ;;  %s146_s4 = int_to_ptr.vmem [resolvable:$true] %s145_s4 }
  0x19   : > { %s697_s8 = smov 256   ;;  %s698_s15 = smov 128  }
  0x1a   : > { %s699_s16 = smov 8   ;;  %p452_p1 = scmp.ge.s32.totalorder %s695_s14, 1 }
  0x1b   : > { %p175_p2 = scmp.lt.s32.totalorder %s695_s14, 3  ;;  %s164_s19 = scalar_lea.hbm %s862_s1, %s449_s27 }
  0x1c   : > { %s142_s30 = scalar_lea.hbm %s869_s0, %s449_s27  ;;  %s165_s28 = sshll.u32 %s164_s19, 4  ;;  %s166_s28 = int_to_ptr.hbm [resolvable:$true] %s165_s28 }
  0x1d   : > { %s143_s5 = sshll.u32 %s142_s30, 4  ;;  %p176_p3 = pnand %p452_p1, %p175_p2  ;;  %s144_s5 = int_to_ptr.hbm [resolvable:$true] %s143_s5 }
  0x1e   : > { %473 = dma.hbm_to_vmem [thread:$0]  (!%p789_p0), %s144_s5, 256, %s146_s4, %s134_s7, %s697_s8, %s698_s15, %s699_s16  }
  0x1f   : > { %s159_s29 = scalar_lea.vmem [#allocation5], %s448_s26  ;;  %s156_s3 = scalar_lea.sflag [#allocation6], %s780_s25 }
  0x20   : > { %s167_s30 = sshll.u32 %s159_s29, 4  ;;  %179 = sbr.rel (%p176_p3) target bundleno = 499 (0x1f3), region = 28  ;;  %s168_s30 = int_to_ptr.vmem [resolvable:$true] %s167_s30 }
  0x21   : > { %476 = dma.hbm_to_vmem [thread:$0]  (!%p789_p0), %s166_s28, 256, %s168_s30, %s156_s3, %s697_s8, %s698_s15, %s699_s16  }
  0x22   : > { %s805_s0 = sand.u32 (!%p176_p3), 1, %s679_s10  }
  0x23   : > { %s453_s4 = sshll.u32 (!%p176_p3), %s805_s0, 4  ;;  %s182_s5 = scalar_lea.sflag (!%p176_p3), [#allocation3], %s805_s0 }
  0x24   : > { %s185_s7 = scalar_lea.vmem (!%p176_p3), [#allocation2], %s453_s4 }
  0x25   : > { %662 = dma.done.wait (%p762_p8), %s182_s5, 256  }
  0x26   : > { %664 = vsyncadd (%p762_p8), %s182_s5, 4294967040  ;;  %s192_s25 = scalar_lea.sflag [#allocation6], %s805_s0  ;;  %s195_s26 = scalar_lea.vmem [#allocation5], %s453_s4 }
  0x27   : > { %666 = dma.done.wait (%p762_p8), %s192_s25, 256  }
  0x28   : > { %668 = vsyncadd (%p762_p8), %s192_s25, 4294967040  ;;  %v276_v0 = vlaneseq  ;;  %v272_v2 = vld [vmem:[%s185_s7] sm:$0xff]  ;;  %v273_v6 = vld [vmem:[%s185_s7 + $0x8] sm:$0xff]  ;;  %s455_s21 = sshll.u32 %s805_s0, 3  ;;  %s457_s27 = sshll.u32 %s687_s12, 3 }
  0x29   : > { %v229_v3 = vld [vmem:[%s195_s26] sm:$0xff]  ;;  %v274_v4 = vmul.f32 0.25, %v272_v2  ;;  %v230_v8 = vld [vmem:[%s195_s26 + $0x8] sm:$0xff]  ;;  %v275_v9 = vmul.f32 0.25, %v273_v6  ;;  %s336_s18 = scalar_lea.hbm %s863_s2, %s457_s27  ;;  %s221_s19 = scalar_lea.vmem [#allocation7], %s455_s21 }
  0x2a   : > { %v277_v1 = vand.u32 127, %v276_v0  ;;  %v231_v5 = vmul.f32 %v229_v3, %v229_v3  ;;  %v232_v10 = vmul.f32 %v230_v8, %v230_v8  ;;  %s338_s28 = sshll.u32 %s221_s19, 4  ;;  %s340_s30 = sshll.u32 %s336_s18, 4  ;;  %s339_s28 = int_to_ptr.vmem [resolvable:$true] %s338_s28  ;;  %s341_s30 = int_to_ptr.hbm [resolvable:$true] %s340_s30 }
  0x2b   : > { %s326_s3 = scalar_lea.sflag [#allocation4], %s805_s0  ;;  %s623_s4 = sshra.s32 %s341_s30, 4  ;;  %s624_s4 = int_to_ptr.hbm [resolvable:$true] %s623_s4 }
  0x2c   : > { %vm278_vm0 = vcmp.lt.s32.totalorder %v277_v1, 32  ;;  %233 = vadd.xlane.f32.xlu1 %v231_v5  ;;  %s625_s12 = scalar_lea.hbm %s624_s4, 8  ;;  %s629_s25 = scalar_lea.hbm %s863_s2, 16 }
  0x2d   : > { %v279_v7 = vsel %vm278_vm0, %v274_v4, -inf  ;;  %v280_v11 = vsel %vm278_vm0, %v275_v9, -inf  ;;  %p626_p4 = scmp.ne.s32.totalorder %s624_s4, %s625_s12  ;;  %p630_p7 = scmp.lt.s32.totalorder %s624_s4, %s863_s2 }
  0x2e   : > { %281 = vmax.xlane.f32.xlu0 %v279_v7  ;;  %p631_p8 = scmp.lt.s32.totalorder %s629_s25, %s625_s12 }
  0x2f   : > { %p627_p5 = pnand %p626_p4, %p766_p9 }
  0x30   : > { %p632_p10 = por %p631_p8, %p630_p7 }
  0x31   : > { %p628_p6 = pneg %p627_p5 }
  0x33   : > { %p633_p13 = pnand %p632_p10, %p628_p6 }
  0x34   : > { %235 = vadd.xlane.f32.xlu1 %v232_v10 }
  0x36   : > { %283 = vmax.xlane.f32.xlu0 %v280_v11 }
  0x9f   : > { %v234_v12 = vpop.xlane.xlu1 %233 }
  0xa0   : > { %v237_v14 = vmax.f32 %v234_v12, 1e-24 }
  0xa1   : > { %v282_v13 = vpop.xlane.xlu0 %281 }
  0xa2   : > { %v285_v15 = vsub.f32 %v274_v4, %v282_v13  ;;  %535 = vrsqrt.f32 %v237_v14  ;;  %vm245_vm1 = vweird.f32 %v237_v14 }
  0xa4   : > { %v287_v16 = vmul.f32 1.442695, %v285_v15 }
  0xa6   : > { %537 = vpow2.f32 %v287_v16 }
  0xa7   : > { %v236_v17 = vpop.xlane.xlu1 %235 }
  0xa8   : > { %v536_v18 = vpop.eup %535  ;;  %v238_v20 = vmax.f32 %v236_v17, 1e-24 }
  0xa9   : > { %v284_v19 = vpop.xlane.xlu0 %283  ;;  %v240_v22 = vmul.f32 %v536_v18, %v237_v14  ;;  %vm246_vm2 = vweird.f32 %v536_v18 }
  0xaa   : > { %v286_v21 = vsub.f32 %v275_v9, %v284_v19  ;;  %539 = vrsqrt.f32 %v238_v20  ;;  %vm247_vm3 = vmor %vm245_vm1, %vm246_vm2  ;;  %vm255_vm4 = vweird.f32 %v238_v20 }
  0xab   : > { %v241_v25 = vmul.f32 %v536_v18, %v240_v22 }
  0xac   : > { %v538_v23 = vpop.eup %537  ;;  %v289_v24 = vmul.f32 1.442695, %v286_v21 }
  0xad   : > { %v291_v26 = vsel %vm278_vm0, %v538_v23, 0.0  ;;  %v242_v27 = vmul.f32 0.5, %v241_v25 }
  0xae   : > { %541 = vpow2.f32 %v289_v24  ;;  %293 = vadd.xlane.f32.xlu2 %v291_v26 }
  0xaf   : > { %v243_v28 = vsub.f32 1.5, %v242_v27 }
  0xb0   : > { %v540_v29 = vpop.eup %539 }
  0xb1   : > { %v250_v30 = vmul.f32 %v540_v29, %v238_v20  ;;  %v244_v33 = vmul.f32 %v536_v18, %v243_v28  ;;  %vm256_vm5 = vweird.f32 %v540_v29 }
  0xb2   : > { %vm257_vm6 = vmor %vm255_vm4, %vm256_vm5 }
  0xb3   : > { %v251_v32 = vmul.f32 %v540_v29, %v250_v30  ;;  %v248_v37 = vsel %vm247_vm3, %v536_v18, %v244_v33 }
  0xb4   : > { %v542_v31 = vpop.eup %541  ;;  %v259_v39 = vmul.f32 %v248_v37, %v229_v3 }
  0xb5   : > { %v292_v34 = vsel %vm278_vm0, %v542_v31, 0.0  ;;  %v252_v35 = vmul.f32 0.5, %v251_v32 }
  0xb6   : > { %295 = vadd.xlane.f32.xlu2 %v292_v34 }
  0xb7   : > { %v253_v36 = vsub.f32 1.5, %v252_v35 }
  0xb9   : > { %v254_v38 = vmul.f32 %v540_v29, %v253_v36 }
  0xbb   : > { %v258_v40 = vsel %vm257_vm6, %v540_v29, %v254_v38 }
  0xbc   : > { %v260_v41 = vmul.f32 %v258_v40, %v230_v8 }
  0xbe   : > { %v261_v42 = vsub.f32 %v259_v39, %v260_v41 }
  0xc0   : > { %v262_v43 = vmul.f32 %v261_v42, %v261_v42 }
  0xc2   : > { %263 = vadd.xlane.f32.xlu0 %v262_v43 }
 0x121   : > { %v294_v44 = vpop.xlane.xlu2 %293 }
 0x122   : > { %543 = vrcp.f32 %v294_v44 }
 0x123   : > { %545 = vlog2.f32 %v294_v44 }
 0x128   : > { %v544_v45 = vpop.eup %543 }
 0x129   : > { %v296_v46 = vpop.xlane.xlu2 %295  ;;  %v302_v47 = vmul.f32 %v544_v45, %v294_v44  ;;  %v546_v48 = vpop.eup %545 }
 0x12a   : > { %547 = vlog2.f32 %v296_v46  ;;  %v298_v50 = vmul.f32 0.6931472, %v546_v48 }
 0x12b   : > { %v303_v49 = vsub.f32 2.0, %v302_v47 }
 0x12c   : > { %v306_v55 = vsub.f32 %v285_v15, %v298_v50 }
 0x12d   : > { %v304_v53 = vmul.f32 %v544_v45, %v303_v49 }
 0x12f   : > { %v305_v56 = vmul.f32 %v304_v53, %v291_v26 }
 0x130   : > { %v548_v51 = vpop.eup %547 }
 0x131   : > { %v300_v52 = vmul.f32 0.6931472, %v548_v51 }
 0x133   : > { %v307_v54 = vsub.f32 %v286_v21, %v300_v52 }
 0x135   : > { %v308_v57 = vsub.f32 %v306_v55, %v307_v54  ;;  %v264_v58 = vpop.xlane.xlu0 %263 }
 0x136   : > { %v265_v60 = vrot.slane %v264_v58, 4 }
 0x137   : > { %v309_v59 = vmul.f32 %v308_v57, %v305_v56 }
 0x138   : > { %v266_v61 = vadd.f32 %v265_v60, %v264_v58 }
 0x139   : > { %310 = vadd.xlane.f32.xlu1 %v309_v59 }
 0x13a   : > { %v267_v62 = vrot.slane %v266_v61, 2 }
 0x13c   : > { %v268_v63 = vadd.f32 %v267_v62, %v266_v61 }
 0x13e   : > { %v269_v0 = vrot.slane %v268_v63, 1 }
 0x140   : > { %v270_v1 = vadd.f32 %v269_v0, %v268_v63 }
 0x142   : > { %460 = vpush %v270_v1 }
 0x173   : > { %s461_s6 = spop %460 }
 0x1ac   : > { %v311_v2 = vpop.xlane.xlu1 %310 }
 0x1ad   : > { %v312_v3 = vrot.slane %v311_v2, 4 }
 0x1af   : > { %v313_v4 = vadd.f32 %v312_v3, %v311_v2 }
 0x1b1   : > { %v314_v5 = vrot.slane %v313_v4, 2 }
 0x1b3   : > { %v315_v6 = vadd.f32 %v314_v5, %v313_v4 }
 0x1b5   : > { %v316_v7 = vrot.slane %v315_v6, 1 }
 0x1b7   : > { %v317_v8 = vadd.f32 %v316_v7, %v315_v6 }
 0x1b9   : > { %462 = vpush %v317_v8 }
 0x1ea   : > { %s463_s8 = spop %462 }
 0x1eb   : > { %s320_s20 = smul.f32 2.0, %s463_s8 }
 0x1ed   : > { %s321_s29 = sadd.f32 %s461_s6, %s320_s20 }
 0x1ef   : > { %v322_v9 = vstv %s321_s29 }
 0x1f0   : > { %324 = vst [vmem:[%s221_s19] sm:$0xff] %v322_v9 }
 0x1f1   : > { %636 = shalt.err (!%p633_p13)
}
 0x1f2   : > { %468 = dma.vmem_to_hbm [thread:$0]  (%p766_p9), %s339_s28, 128, %s341_s30, %s326_s3  }
 0x1f3 PF: > { %s352_s0 = sand.u32 1, %s675_s9   ;;  %p478_p0 = pnand %p447_p12, %p773_p11 }
 0x1f4   : > { %s353_s27 = scalar_lea.sflag [#allocation4], %s352_s0 }
 0x1f5   : > { %p479_p1 = pneg %p478_p0 }
 0x1f7   : > { %670 = dma.done.wait (%p479_p1), %s353_s27, 128  }
 0x1f8   : > { %672 = vsyncadd (%p479_p1), %s353_s27, 4294967168  ;;  %s21_s14 = sadd.s32 1, %s695_s14   ;;  %s871_s9 = smov %s679_s10 }
 0x1f9   : > { %p18_p2 = scmp.ge.s32.totalorder %s21_s14, 4   ;;  %s872_s10 = smov %s683_s11 }
 0x1fa   : > { %s873_s11 = smov %s771_s23  ;;  %s874_s12 = smov %s691_s13 }
 0x1fb   : > { %s875_s13 = smov %s877_s17  ;;  %20 = sbr.rel (!%p18_p2) target bundleno = 10 (0xa), region = 90 }
 0x200   :  { %359 = vsyncpa [#allocation3], 1 }
 0x201   :  { %361 = vsyncpa [#allocation3 + $0x1], 1 }
 0x202   :  { %362 = vsyncpa [#allocation6], 1 }
 0x203   :  { %364 = vsyncpa [#allocation6 + $0x1], 1 }
 0x204   :  { %365 = vsyncpa [#allocation4], 1 }
 0x205   :  { %367 = vsyncpa [#allocation4 + $0x1], 1 }

</bundles_post_ra>
